<compile_context>
chip_gen: v7x
topology: tpu7x:2x2x1
jax: 0.10.0
libtpu: 0.0.40
codegen_flags: <defaults>
</compile_context>

<pallas_src>
import jax
import jax.numpy as jnp
from jax import lax
from jax.experimental import pallas as pl
from jax.experimental.pallas import tpu as pltpu

_LANES = 128
_SUBLANES = 8
_DEFAULT_TILE_ROWS = 4096  # (4096, 128) f32 tile = 2 MiB per input per buffer
_SMALL_ROWS_MAX = 1024     # single-block (no-grid) path up to (1024, 128) elems


def _round_up(x: int, m: int) -> int:
    return ((x + m - 1) // m) * m


def _neg_log_sigmoid(pos, neg, gamma):
    # Elementwise -log(gamma + sigmoid(pos - neg)), computed in f32.
    # (Cast happens here, in-kernel, so the wrapper never widens HBM traffic.)
    diff = pos.astype(jnp.float32) - neg.astype(jnp.float32)
    return -jnp.log(jnp.float32(gamma) + jax.nn.sigmoid(diff))


def _make_small_kernel(gamma: float, n: int, rows: int):
    """Single-block path: whole (rows, 128) problem in one VMEM block, no grid."""
    needs_mask = rows * _LANES != n

    def kernel(pos_ref, neg_ref, out_ref):
        nl = _neg_log_sigmoid(pos_ref[...], neg_ref[...], gamma)
        if needs_mask:
            idx = (lax.broadcasted_iota(jnp.int32, (rows, _LANES), 0) * _LANES
                   + lax.broadcasted_iota(jnp.int32, (rows, _LANES), 1))
            nl = jnp.where(idx < n, nl, jnp.float32(0.0))
        out_ref[0, 0] = jnp.sum(nl) * jnp.float32(1.0 / n)

    return kernel


def _make_tiled_kernel(gamma: float, n: int, n_chunks: int, tile_rows: int):
    """Pipelined reduction over row-chunks with an (8,128) VMEM accumulator."""
    needs_mask = n_chunks * tile_rows * _LANES != n

    def kernel(pos_ref, neg_ref, out_ref, acc_ref):
        chunk = pl.program_id(0)

        @pl.when(chunk == 0)
        def _():
            acc_ref[...] = jnp.zeros_like(acc_ref)

        nl = _neg_log_sigmoid(pos_ref[...], neg_ref[...], gamma)

        if needs_mask:
            # Mask padded / out-of-range elements so they contribute exactly 0.
            row0 = chunk * tile_rows
            idx = ((row0 + lax.broadcasted_iota(jnp.int32, (tile_rows, _LANES), 0))
                   * _LANES
                   + lax.broadcasted_iota(jnp.int32, (tile_rows, _LANES), 1))
            nl = jnp.where(idx < n, nl, jnp.float32(0.0))

        # Steady-state work is VPU-only: fold the (tile_rows, 128) tile into an
        # (8, 128) vreg-shaped partial sum (adds across vregs; no XLU, no SMEM RMW).
        acc_ref[...] += jnp.sum(
            nl.reshape(tile_rows // _SUBLANES, _SUBLANES, _LANES), axis=0)

        @pl.when(chunk == pl.num_programs(0) - 1)
        def _():
            # Single cross-lane reduce + scale, once, in the finalize step.
            out_ref[0, 0] = jnp.sum(acc_ref[...]) * jnp.float32(1.0 / n)

    return kernel


def bpr_loss(pos_score: jax.Array, neg_score: jax.Array, gamma: float = 1e-10,
             tile_rows: int = _DEFAULT_TILE_ROWS) -> jax.Array:
    """Pallas implementation of BPRLoss.forward. Inputs: (N,) arrays. Output: scalar."""
    assert pos_score.shape == neg_score.shape
    assert pos_score.ndim == 1
    assert tile_rows > 0 and tile_rows % _SUBLANES == 0
    (n,) = pos_score.shape

    # Lane-dense layout: view (N,) as (rows, 128). Only the (at most 127-element)
    # tail is padded; for N % 128 == 0 the reshape is free. No dtype widening here.
    rem = n % _LANES
    if rem:
        pad = _LANES - rem
        pos_score = jnp.pad(pos_score, (0, pad))
        neg_score = jnp.pad(neg_score, (0, pad))
    rows = (n + _LANES - 1) // _LANES
    pos2d = pos_score.reshape(rows, _LANES)
    neg2d = neg_score.reshape(rows, _LANES)

    itemsize = jnp.dtype(pos2d.dtype).itemsize
    cost = pl.CostEstimate(flops=5 * n, transcendentals=3 * n,
                           bytes_accessed=2 * n * itemsize + 4)

    if rows <= tile_rows and rows <= _SMALL_ROWS_MAX:
        # Fast path: fits a single VMEM block; no grid / pipeline overhead.
        out = pl.pallas_call(
            _make_small_kernel(gamma, n, rows),
            out_shape=jax.ShapeDtypeStruct((1, 1), jnp.float32),
            grid_spec=pltpu.PrefetchScalarGridSpec(
                num_scalar_prefetch=0,
                grid=(),
                in_specs=[pl.BlockSpec((rows, _LANES), lambda: (0, 0)),
                          pl.BlockSpec((rows, _LANES), lambda: (0, 0))],
                out_specs=pl.BlockSpec(memory_space=pltpu.SMEM),
            ),
            cost_estimate=cost,
        )(pos2d, neg2d)
        return out[0, 0]

    # Tiled, pipelined reduction path. Guarantee >= 2 chunks so the DMA of the
    # next tile overlaps compute of the current one (mem-bound kernel).
    tr = min(tile_rows, _round_up((rows + 1) // 2, _SUBLANES))
    n_chunks = (rows + tr - 1) // tr
    out = pl.pallas_call(
        _make_tiled_kernel(gamma, n, n_chunks, tr),
        out_shape=jax.ShapeDtypeStruct((1, 1), jnp.float32),
        grid_spec=pltpu.PrefetchScalarGridSpec(
            num_scalar_prefetch=0,
            grid=(n_chunks,),
            in_specs=[pl.BlockSpec((tr, _LANES), lambda i: (i, 0)),
                      pl.BlockSpec((tr, _LANES), lambda i: (i, 0))],
            out_specs=pl.BlockSpec(memory_space=pltpu.SMEM),
            scratch_shapes=[pltpu.VMEM((_SUBLANES, _LANES), jnp.float32)],
        ),
        compiler_params=pltpu.CompilerParams(
            dimension_semantics=("arbitrary",),  # reduction axis
        ),
        cost_estimate=cost,
    )(pos2d, neg2d)
    return out[0, 0]


def _ref(pos, neg, gamma=1e-10):
    return -jnp.mean(jnp.log(jnp.float32(gamma) + jax.nn.sigmoid(
        pos.astype(jnp.float32) - neg.astype(jnp.float32))))


if __name__ == "__main__":
    key = jax.random.PRNGKey(0)
    k1, k2, k3, k4, k5, k6 = jax.random.split(key, 6)

    # 1) Small case matching the module docstring shape convention (N,) -> fast path.
    N = 8
    pos = jax.random.normal(k1, (N,), dtype=jnp.float32)
    neg = jax.random.normal(k2, (N,), dtype=jnp.float32)
    loss = jax.block_until_ready(bpr_loss(pos, neg))
    ref = _ref(pos, neg)
    assert jnp.allclose(loss, ref, atol=1e-5, rtol=1e-5), (loss, ref)

    # 2) Exercise the tiled/pipelined path at a small size (tiny tile_rows),
    #    plus bf16 inputs (in-kernel cast) and a ragged tail (masking).
    N2 = 3000
    pos2 = jax.random.normal(k3, (N2,), dtype=jnp.bfloat16)
    neg2 = jax.random.normal(k4, (N2,), dtype=jnp.bfloat16)
    loss2 = jax.block_until_ready(bpr_loss(pos2, neg2, tile_rows=8))
    ref2 = _ref(pos2, neg2)
    assert jnp.allclose(loss2, ref2, atol=1e-4, rtol=1e-4), (loss2, ref2)

    # 3) Moderate size with default tiling: takes the pipelined path with the
    #    "at least 2 chunks" tile shrink, ragged tail masked.
    N3 = 140_000
    pos3 = jax.random.normal(k5, (N3,), dtype=jnp.float32)
    neg3 = jax.random.normal(k6, (N3,), dtype=jnp.float32)
    loss3 = jax.block_until_ready(bpr_loss(pos3, neg3))
    ref3 = _ref(pos3, neg3)
    assert jnp.allclose(loss3, ref3, atol=1e-4, rtol=1e-4), (loss3, ref3)

    print("KERNEL_OK")
</pallas_src>

<mosaic_0001>
module attributes {stable_mosaic.version = 11 : i64} {
  func.func @kernel(%arg0: memref<1x128xf32, #tpu.memory_space<vmem>>, %arg1: memref<1x128xf32, #tpu.memory_space<vmem>>, %arg2: memref<1x1xf32, #tpu.memory_space<smem>>) attributes {dimension_semantics = [], scalar_prefetch = 0 : i64, scratch_operands = 0 : i64, tpu.core_type = #tpu.core_type<tc>} {
    %c0 = arith.constant 0 : index
    %c0_0 = arith.constant 0 : index
    %0 = vector.load %arg0[%c0, %c0_0] : memref<1x128xf32, #tpu.memory_space<vmem>>, vector<1x128xf32>
    %c0_1 = arith.constant 0 : index
    %c0_2 = arith.constant 0 : index
    %1 = vector.load %arg1[%c0_1, %c0_2] : memref<1x128xf32, #tpu.memory_space<vmem>>, vector<1x128xf32>
    %2 = arith.subf %0, %1 : vector<1x128xf32>
    %3 = arith.negf %2 : vector<1x128xf32>
    %4 = math.exp %3 : vector<1x128xf32>
    %cst = arith.constant 1.000000e+00 : f32
    %5 = vector.broadcast %cst : f32 to vector<1x128xf32>
    %6 = arith.addf %5, %4 : vector<1x128xf32>
    %7 = arith.divf %5, %6 : vector<1x128xf32>
    %cst_3 = arith.constant 1.000000e-10 : f32
    %8 = vector.broadcast %cst_3 : f32 to vector<1x128xf32>
    %9 = arith.addf %8, %7 : vector<1x128xf32>
    %10 = math.log %9 : vector<1x128xf32>
    %cst_4 = arith.constant 0.000000e+00 : f32
    %11 = vector.broadcast %cst_4 : f32 to vector<1x128xf32>
    %12 = arith.subf %11, %10 : vector<1x128xf32>
    %13 = tpu.iota {dimensions = array<i32: 0>} : vector<1x128xi32>
    %c128_i32 = arith.constant 128 : i32
    %14 = vector.broadcast %c128_i32 : i32 to vector<1x128xi32>
    %15 = arith.muli %13, %14 : vector<1x128xi32>
    %16 = tpu.iota {dimensions = array<i32: 1>} : vector<1x128xi32>
    %17 = arith.addi %15, %16 : vector<1x128xi32>
    %c8_i32 = arith.constant 8 : i32
    %18 = vector.broadcast %c8_i32 : i32 to vector<1x128xi32>
    %19 = arith.cmpi slt, %17, %18 : vector<1x128xi32>
    %cst_5 = arith.constant 0.000000e+00 : f32
    %20 = vector.broadcast %cst_5 : f32 to vector<1x128xf32>
    %21 = arith.select %19, %12, %20 : vector<1x128xi1>, vector<1x128xf32>
    %22 = vector.shape_cast %21 : vector<1x128xf32> to vector<1x1x128xf32>
    %cst_6 = arith.constant dense<0.000000e+00> : vector<1xf32>
    %23 = vector.multi_reduction <add>, %22, %cst_6 [1, 2] : vector<1x1x128xf32> to vector<1xf32>
    %24 = vector.shape_cast %23 : vector<1xf32> to vector<1x1x1xf32>
    %25 = vector.extract %24[0, 0, 0] : f32 from vector<1x1x1xf32>
    %cst_7 = arith.constant 1.250000e-01 : f32
    %26 = arith.mulf %25, %cst_7 : f32
    %c0_8 = arith.constant 0 : index
    %c0_9 = arith.constant 0 : index
    %27 = memref.load %arg2[%c0_8, %c0_9] : memref<1x1xf32, #tpu.memory_space<smem>>
    memref.store %26, %arg2[%c0_8, %c0_9] : memref<1x1xf32, #tpu.memory_space<smem>>
    return
  }
}

</mosaic_0001>

<bundles_post_ra>
// kernel: tpu_custom_call.1
= control target key start
LH: loop header
LB: loop body
LE: loop exit
PB: predicated region body
PF: predicated region fallthrough
CT: control target
= control target key end

     0   :  { %7 = vsyncpa [#allocation3], 0  ;;  %s164_s0 = inlined_call_operand.hbm [shape: f32[1,128], index: 0, kind: input, shape index: {}]   ;;  %s165_s1 = inlined_call_operand.vmem [shape: f32[1,128], index: 1, kind: input, shape index: {}]   ;;  %s166_s2 = inlined_call_operand.hbm [shape: f32[1,1], index: 2, kind: output, shape index: {}]  }
   0x1   :  { %8 = vsyncpa [#allocation4], 0  ;;  %s120_s9 = smov [#allocation2]   ;;  %s84_s13 = scalar_lea.hbm %s164_s0, 16 }
   0x2   :  { %s15_s10 = sshll.u32 %s120_s9, 4  ;;  %p85_p0 = scmp.ne.s32.totalorder %s164_s0, %s84_s13  ;;  %s16_s10 = int_to_ptr.vmem [resolvable:$true] %s15_s10 }
   0x3   :  { %p88_p1 = scmp.lt.u32.totalorder %s84_s13, %s164_s0 }
   0x5   :  { %p90_p2 = pnand %p88_p1, %p85_p0 }
   0x7   :  { %93 = shalt.err (!%p90_p2)
}
   0x8   :  { %s94_s18 = scalar_lea.vmem %s16_s10, 16  ;;  %s98_s19 = scalar_lea.vmem %s16_s10, 32 }
   0x9   :  { %p95_p3 = scmp.ne.s32.totalorder %s16_s10, %s94_s18  ;;  %p99_p4 = scmp.lt.s32.totalorder %s16_s10, %s16_s10 }
   0xa   :  { %p100_p5 = scmp.lt.s32.totalorder %s98_s19, %s94_s18 }
   0xc   :  { %p101_p6 = por %p100_p5, %p99_p4 }
   0xe   :  { %p102_p7 = pnand %p101_p6, %p95_p3 }
  0x10   :  { %105 = shalt.err (!%p102_p7)
}
  0x11   :  { %18 = dma.hbm_to_vmem [thread:$0]  %s164_s0, 16, %s16_s10, [#allocation3]  }
  0x12   :  { %116 = dma.done.wait [#allocation3], 16  }
  0x13   :  { %117 = vsyncadd [#allocation3], 4294967280  ;;  %v24_v0 = vld [vmem:[#allocation2] sm:$0x1]  ;;  %v37_v6 = vlaneseq  ;;  %vm45_vm1 = vcmask 1040384   ;;  %s106_s26 = scalar_lea.hbm %s166_s2, 16 }
  0x14   :  { %v25_v1 = vld [vmem:[%s165_s1] sm:$0x1]  ;;  %p107_p8 = scmp.ne.s32.totalorder %s166_s2, %s106_s26  ;;  %p110_p9 = scmp.lt.u32.totalorder %s106_s26, %s166_s2 }
  0x15   :  { %v26_v2 = vsub.f32 %v24_v0, %v25_v1  ;;  %v38_v9 = vshrl.u32 %v37_v6, 7  ;;  %v41_v11 = vand.u32 127, %v37_v6 }
  0x16   :  { %p112_p10 = pnand %p110_p9, %p107_p8 }
  0x17   :  { %v73_v3 = vmul.f32 -1.442695, %v26_v2  ;;  %v39_v10 = vmul.u32 128, %v38_v9 }
  0x19   :  { %78 = vpow2.f32 %v73_v3  ;;  %v42_v12 = vadd.s32 %v41_v11, %v39_v10 }
  0x1b   :  { %vm43_vm0 = vcmp.lt.s32.totalorder %v42_v12, 8 }
  0x23   :  { %v79_v4 = vpop.eup %78 }
  0x24   :  { %v30_v5 = vadd.f32 1.0, %v79_v4 }
  0x26   :  { %80 = vrcp.f32 %v30_v5 }
  0x30   :  { %v81_v7 = vpop.eup %80 }
  0x31   :  { %v33_v8 = vadd.f32 1e-10, %v81_v7 }
  0x33   :  { %82 = vlog2.f32 %v33_v8 }
  0x3d   :  { %v83_v13 = vpop.eup %82 }
  0x3e   :  { %v35_v14 = vmul.f32 0.6931472, %v83_v13 }
  0x40   :  { %v36_v15 = vsub.f32 0.0, %v35_v14 }
  0x42   :  { %v44_v16 = vsel %vm43_vm0, %v36_v15, 0.0 }
  0x43   :  { %v46_v17 = vsel %vm45_vm1, %v44_v16, 0.0 }
  0x44   :  { %47 = vadd.xlane.f32.xlu0 %v46_v17 }
  0xd1   :  { %v48_v18 = vpop.xlane.xlu0 %47 }
  0xd2   :  { %v49_v19 = vrot.slane %v48_v18, 4 }
  0xd4   :  { %v50_v20 = vadd.f32 %v49_v19, %v48_v18 }
  0xd6   :  { %v51_v21 = vrot.slane %v50_v20, 2 }
  0xd8   :  { %v52_v22 = vadd.f32 %v51_v21, %v50_v20 }
  0xda   :  { %v53_v23 = vrot.slane %v52_v22, 1 }
  0xdc   :  { %v54_v24 = vadd.f32 %v53_v23, %v52_v22 }
  0xde   :  { %74 = vpush %v54_v24 }
 0x10f   :  { %s75_s0 = spop %74 }
 0x110   :  { %s56_s1 = smul.f32 0.125, %s75_s0 }
 0x112   :  { %58 = sst [smem:[#allocation5]] %s56_s1 }
 0x113   :  { %115 = shalt.err (!%p112_p10)
}
 0x114   :  { %s121_s3 = smov [#allocation5]  }
 0x115   :  { %66 = dma.smem_to_hbm %s121_s3, 16, %s166_s2, [#allocation4]  }
 0x116   :  { %118 = dma.done.wait [#allocation4], 16  }
 0x117   :  { %119 = vsyncadd [#allocation4], 4294967280 }
 0x118   :  { %70 = sfence }
 0x119   :  { %71 = vsyncpa [#allocation3], 1 }
 0x11a   :  { %72 = vsyncpa [#allocation4], 1 }

</bundles_post_ra>
